<compile_context>
chip_gen: v5e
topology: v5e:2x2
jax: 0.10.0
libtpu: 0.0.40
codegen_flags: <defaults>
</compile_context>

<pallas_src>
import math
import functools

import jax
import jax.numpy as jnp
from jax import lax
from jax.experimental import pallas as pl
from jax.experimental.pallas import tpu as pltpu

_NEG_INF = -1e30  # large finite negative: avoids exp(-inf - (-inf)) = NaN


def _attn_kernel(*refs, H, tq, tk, nk, causal, mask_ndim, with_attn,
                 proj_per_qtile):
    idx = 0
    x_ref = refs[idx]; idx += 1            # (1, T, C)
    w_ref = refs[idx]; idx += 1            # (C, 3H) fused [Wq/scale | Wk | Wv]
    mask_ref = None
    if mask_ndim:
        mask_ref = refs[idx]; idx += 1     # (tq, tk) or (1, tq, tk)
    out_ref = refs[idx]; idx += 1          # (1, tq, H)
    attn_ref = None
    if with_attn:
        attn_ref = refs[idx]; idx += 1     # (1, tq, T)   (tk == T here)
    q_s, k_s, v_s = refs[idx], refs[idx + 1], refs[idx + 2]; idx += 3   # (T, H)
    if not with_attn:
        m_s, l_s, acc_s = refs[idx], refs[idx + 1], refs[idx + 2]       # flash state

    qi = pl.program_id(1)
    ki = pl.program_id(2)

    proj_now = (ki == 0) if proj_per_qtile else ((qi == 0) & (ki == 0))

    @pl.when(proj_now)
    def _():
        # One fused (T, C) @ (C, 3H) projection, cached in VMEM scratch and reused
        # by every (qi, ki) tile. 1/sqrt(H) is pre-folded into Wq.
        qkv = jnp.dot(x_ref[0], w_ref[...], preferred_element_type=jnp.float32)
        q_s[...] = qkv[:, 0:H].astype(q_s.dtype)
        k_s[...] = qkv[:, H:2 * H].astype(k_s.dtype)
        v_s[...] = qkv[:, 2 * H:3 * H].astype(v_s.dtype)

    q_start = pl.multiple_of(qi * tq, tq)
    k_start = pl.multiple_of(ki * tk, tk)

    def masked_scores():
        q = q_s[pl.ds(q_start, tq), :]                       # (tq, H), pre-scaled
        k = k_s[pl.ds(k_start, tk), :]                       # (tk, H)
        # Contract on the last dim of both operands: no k.T / XLU transpose.
        s = lax.dot_general(q, k, dimension_numbers=(((1,), (1,)), ((), ())),
                            preferred_element_type=jnp.float32)   # (tq, tk) f32
        if causal:
            rc = (lax.broadcasted_iota(jnp.int32, (tq, tk), 0)
                  - lax.broadcasted_iota(jnp.int32, (tq, tk), 1))
            s = jnp.where(rc + (q_start - k_start) >= 0, s, _NEG_INF)
        if mask_ndim == 2:
            s = s + mask_ref[...].astype(jnp.float32)
        elif mask_ndim == 3:
            s = s + mask_ref[0].astype(jnp.float32)
        return s

    if with_attn:
        # Full-row path (tk == T, nk == 1): the attn row must be materialized anyway.
        s = masked_scores()                                   # (tq, T)
        m = jnp.max(s, axis=-1, keepdims=True)
        e = jnp.exp(s - m)
        denom = jnp.sum(e, axis=-1, keepdims=True)
        attn = e * pl.reciprocal(denom, approx=True)          # (tq, T) f32
        v = v_s[...]                                          # (T, H)
        out = jnp.dot(attn.astype(v.dtype), v, preferred_element_type=jnp.float32)
        out_ref[0] = out.astype(out_ref.dtype)
        attn_ref[0] = attn.astype(attn_ref.dtype)
    else:
        # Flash-style online softmax over key tiles; normalize once at the end with a
        # (tq, H) multiply (no (tq, T) broadcast multiply, no full-row temporaries).
        @pl.when(ki == 0)
        def _():
            m_s[...] = jnp.full_like(m_s, -jnp.inf)
            l_s[...] = jnp.zeros_like(l_s)
            acc_s[...] = jnp.zeros_like(acc_s)

        def step():
            s = masked_scores()                               # (tq, tk)
            v = v_s[pl.ds(k_start, tk), :]                    # (tk, H)
            m_prev = m_s[...]
            m_new = jnp.maximum(m_prev, jnp.max(s, axis=-1, keepdims=True))
            alpha = jnp.exp(m_prev - m_new)
            p = jnp.exp(s - m_new)
            l_s[...] = alpha * l_s[...] + jnp.sum(p, axis=-1, keepdims=True)
            acc_s[...] = alpha * acc_s[...] + jnp.dot(
                p.astype(v.dtype), v, preferred_element_type=jnp.float32)
            m_s[...] = m_new

        if causal:
            # Skip key tiles that lie entirely above the diagonal (~2x fewer FLOPs).
            @pl.when(k_start <= q_start + tq - 1)
            def _():
                step()
        else:
            step()

        @pl.when(ki == nk - 1)
        def _():
            out_ref[0] = (acc_s[...] * pl.reciprocal(l_s[...], approx=True)
                          ).astype(out_ref.dtype)


def _device_kind():
    try:
        return jax.devices()[0].device_kind.lower()
    except Exception:
        return ""


def _default_vmem_limit_bytes():
    # ~3/4 of physical VMEM: ~48 MiB on v7x (64 MiB), ~96 MiB on v5e/v6e (128 MiB).
    try:
        cap = int(pltpu.get_tpu_info().vmem_capacity_bytes)
        return min(cap * 3 // 4, 100 * 1024 * 1024)
    except Exception:
        return 64 * 1024 * 1024


def self_attention_head(x, wq, wk, wv, mask=None, *, causal=False,
                        return_attn_weights=True, attn_dtype=None,
                        block_q=None, block_k=None):
    """x: (B, T, C); w*: (C, H); mask: optional additive mask of shape (T, T),
    (1, T, T) or (B, T, T), kept in its native dtype. If causal=True a causal mask
    is generated in-kernel (no mask DMA).
    Returns (out (B, T, H), attn_weights (B, T, T) or None)."""
    B, T, C = x.shape
    H = wq.shape[1]
    scale = math.sqrt(H)

    # Fuse the three projections into one (C, 3H) MXU operand; fold 1/sqrt(H) into Wq
    # (scaled in f32 before the single cast back to x.dtype).
    w_fused = jnp.concatenate(
        [wq.astype(jnp.float32) / scale,
         wk.astype(jnp.float32),
         wv.astype(jnp.float32)], axis=1).astype(x.dtype)

    kind = _device_kind()
    if block_q is None:
        if ("v5" not in kind) and T % 256 == 0:
            block_q = 256          # v6e/v7x MXU is 2x256x256: fill the M dimension
        elif T % 128 == 0:
            block_q = 128
        else:
            block_q = T
    tq = block_q
    assert T % tq == 0, "block_q must divide T"
    nq = T // tq

    if return_attn_weights:
        tk = T                     # full key rows are needed for the attn output
    else:
        if block_k is None:
            block_k = next((c for c in (512, 256, 128) if T % c == 0), T)
        tk = min(block_k, T)
    assert T % tk == 0, "block_k must divide T"
    nk = T // tk

    # Optional additive mask: keep native dtype (no host f32 upcast -> half the DMA).
    mask_ndim = 0
    mask_arr = None
    if mask is not None:
        mask_arr = jnp.asarray(mask)
        if mask_arr.ndim == 3 and mask_arr.shape[0] == 1:
            mask_arr = mask_arr[0]
        if mask_arr.ndim == 2:
            mask_ndim = 2
        elif mask_arr.ndim == 3:
            mask_ndim = 3
        else:
            raise ValueError("mask must have rank 2 or 3")

    # Stored attn_weights dtype defaults to bf16 (storage only; softmax math is f32).
    attn_store_dtype = (jnp.dtype(attn_dtype) if attn_dtype is not None
                        else jnp.dtype(jnp.bfloat16))

    # With B < 2 a "parallel" batch axis would idle one megacore TC: recompute the
    # cached projection per query tile so the qi axis can be parallel instead.
    proj_per_qtile = B < 2

    in_specs = [
        pl.BlockSpec((1, T, C), lambda b, qi, ki: (b, 0, 0)),    # x (resident per batch)
        pl.BlockSpec((C, 3 * H), lambda b, qi, ki: (0, 0)),      # fused Wqkv
    ]
    inputs = [x, w_fused]
    if mask_ndim == 2:
        in_specs.append(pl.BlockSpec((tq, tk), lambda b, qi, ki: (qi, ki)))
        inputs.append(mask_arr)
    elif mask_ndim == 3:
        in_specs.append(pl.BlockSpec((1, tq, tk), lambda b, qi, ki: (b, qi, ki)))
        inputs.append(mask_arr)

    out_shape = [jax.ShapeDtypeStruct((B, T, H), x.dtype)]
    out_specs = [pl.BlockSpec((1, tq, H), lambda b, qi, ki: (b, qi, 0))]
    if return_attn_weights:
        out_shape.append(jax.ShapeDtypeStruct((B, T, T), attn_store_dtype))
        out_specs.append(pl.BlockSpec((1, tq, T), lambda b, qi, ki: (b, qi, 0)))

    scratch_shapes = [
        pltpu.VMEM((T, H), x.dtype),      # Q cache (per batch element)
        pltpu.VMEM((T, H), x.dtype),      # K cache
        pltpu.VMEM((T, H), x.dtype),      # V cache
    ]
    if not return_attn_weights:
        scratch_shapes += [
            pltpu.VMEM((tq, 1), jnp.float32),    # running max
            pltpu.VMEM((tq, 1), jnp.float32),    # running denominator
            pltpu.VMEM((tq, H), jnp.float32),    # output accumulator
        ]

    kernel = functools.partial(
        _attn_kernel, H=H, tq=tq, tk=tk, nk=nk, causal=causal,
        mask_ndim=mask_ndim, with_attn=return_attn_weights,
        proj_per_qtile=proj_per_qtile)

    itemsize = jnp.dtype(x.dtype).itemsize
    flops = 2 * B * T * C * 3 * H + 4 * B * T * T * H
    if causal:
        flops -= 2 * B * T * T * H        # ~half of QK^T / AV skipped
    bytes_accessed = (x.size + w_fused.size + B * T * H) * itemsize
    if return_attn_weights:
        bytes_accessed += B * T * T * attn_store_dtype.itemsize
    if mask_arr is not None:
        bytes_accessed += mask_arr.size * jnp.dtype(mask_arr.dtype).itemsize
    cost = pl.CostEstimate(flops=int(flops), transcendentals=int(B * T * T),
                           bytes_accessed=int(bytes_accessed))

    results = pl.pallas_call(
        kernel,
        out_shape=tuple(out_shape),
        grid_spec=pltpu.PrefetchScalarGridSpec(
            num_scalar_prefetch=0,
            grid=(B, nq, nk),
            in_specs=in_specs,
            out_specs=tuple(out_specs),
            scratch_shapes=scratch_shapes,
        ),
        compiler_params=pltpu.CompilerParams(
            dimension_semantics=("parallel",
                                 "parallel" if proj_per_qtile else "arbitrary",
                                 "arbitrary"),
            vmem_limit_bytes=_default_vmem_limit_bytes(),
        ),
        cost_estimate=cost,
    )(*inputs)

    if return_attn_weights:
        out, attn = results
        return out, attn
    out = results[0] if isinstance(results, (list, tuple)) else results
    return out, None


def _reference(x, wq, wk, wv, mask=None):
    scale = math.sqrt(wq.shape[1])
    q = x @ wq
    k = x @ wk
    v = x @ wv
    scores = jnp.einsum("btd,bsd->bts", q, k) / scale
    if mask is not None:
        scores = scores + mask
    attn = jax.nn.softmax(scores, axis=-1)
    return attn @ v, attn


if __name__ == "__main__":
    # Small shapes consistent with the module: B=2, T=8, d_model=32, head_size=16
    B, T, C, H = 2, 8, 32, 16

    key = jax.random.PRNGKey(0)
    kx, kq, kk, kv, kx2, km = jax.random.split(key, 6)

    x = jax.random.normal(kx, (B, T, C), dtype=jnp.float32)

    # nn.Linear(d_model, head_size, bias=False)-style init; stored transposed (C, H).
    bound = 1.0 / math.sqrt(C)
    wq = jax.random.uniform(kq, (C, H), jnp.float32, -bound, bound)
    wk = jax.random.uniform(kk, (C, H), jnp.float32, -bound, bound)
    wv = jax.random.uniform(kv, (C, H), jnp.float32, -bound, bound)

    causal_add = jnp.where(
        jnp.arange(T)[:, None] >= jnp.arange(T)[None, :], 0.0, -1e9
    ).astype(jnp.float32)

    tol = dict(atol=5e-3, rtol=5e-3)
    attn_tol = dict(atol=1e-2, rtol=1e-2)   # attn stored as bf16 by default

    ref_out_c, ref_attn_c = _reference(x, wq, wk, wv,
                                       jnp.broadcast_to(causal_add, (B, T, T)))
    ref_out_n, ref_attn_n = _reference(x, wq, wk, wv)

    # 1) Causal mask generated in-kernel; attn stored as bf16 (default).
    out, attn = self_attention_head(x, wq, wk, wv, causal=True)
    jax.block_until_ready(out); jax.block_until_ready(attn)
    assert jnp.allclose(out, ref_out_c, **tol), "causal: output mismatch"
    assert jnp.allclose(attn.astype(jnp.float32), ref_attn_c, **attn_tol), \
        "causal: attn mismatch"

    # 2) Explicit (T, T) additive mask (shared across the batch), f32 attn weights.
    out2, attn2 = self_attention_head(x, wq, wk, wv, mask=causal_add,
                                      attn_dtype=jnp.float32)
    jax.block_until_ready(out2)
    assert jnp.allclose(out2, ref_out_c, **tol), "mask: output mismatch"
    assert jnp.allclose(attn2, ref_attn_c, **tol), "mask: attn mismatch"

    # 3) No mask at all (mask path fully specialized away).
    out3, attn3 = self_attention_head(x, wq, wk, wv, attn_dtype=jnp.float32)
    jax.block_until_ready(out3)
    assert jnp.allclose(out3, ref_out_n, **tol), "nomask: output mismatch"
    assert jnp.allclose(attn3, ref_attn_n, **tol), "nomask: attn mismatch"

    # 4) Hot path: drop the (B, T, T) attn writeback (online-softmax path, nk=1).
    out4, attn4 = self_attention_head(x, wq, wk, wv, causal=True,
                                      return_attn_weights=False)
    jax.block_until_ready(out4)
    assert attn4 is None
    assert jnp.allclose(out4, ref_out_c, **tol), "no-attn-output: output mismatch"

    # 5) Longer sequence: key-tiled online softmax with causal tile skipping (nk=2).
    T2 = 256
    x2 = jax.random.normal(kx2, (B, T2, C), dtype=jnp.float32)
    causal_add2 = jnp.where(
        jnp.arange(T2)[:, None] >= jnp.arange(T2)[None, :], 0.0, -1e9
    ).astype(jnp.float32)
    ref_out5, _ = _reference(x2, wq, wk, wv,
                             jnp.broadcast_to(causal_add2, (B, T2, T2)))
    out5, _ = self_attention_head(x2, wq, wk, wv, causal=True,
                                  return_attn_weights=False,
                                  block_q=128, block_k=128)
    jax.block_until_ready(out5)
    assert jnp.allclose(out5, ref_out5, **tol), "flash-causal: output mismatch"

    # 6) Per-batch (B, T, T) additive mask passed in bf16, key-tiled hot path.
    mask_b = (jax.random.uniform(km, (B, T2, T2)) < 0.5).astype(jnp.float32) * -1e9
    ref_out6, _ = _reference(x2, wq, wk, wv, mask_b)
    out6, _ = self_attention_head(x2, wq, wk, wv, mask=mask_b.astype(jnp.bfloat16),
                                  return_attn_weights=False,
                                  block_q=128, block_k=128)
    jax.block_until_ready(out6)
    assert jnp.allclose(out6, ref_out6, **tol), "flash-mask: output mismatch"

    print("KERNEL_OK")
</pallas_src>

<mosaic_0001>
module attributes {stable_mosaic.version = 11 : i64} {
  func.func @_attn_kernel(%arg0: i32, %arg1: i32, %arg2: i32, %arg3: memref<1x8x32xf32, #tpu.memory_space<vmem>>, %arg4: memref<32x48xf32, #tpu.memory_space<vmem>>, %arg5: memref<1x8x16xf32, #tpu.memory_space<vmem>>, %arg6: memref<1x8x8xbf16, #tpu.memory_space<vmem>>, %arg7: memref<8x16xf32, #tpu.memory_space<vmem>>, %arg8: memref<8x16xf32, #tpu.memory_space<vmem>>, %arg9: memref<8x16xf32, #tpu.memory_space<vmem>>) attributes {dimension_semantics = [#tpu.dimension_semantics<parallel>, #tpu.dimension_semantics<arbitrary>, #tpu.dimension_semantics<arbitrary>], iteration_bounds = array<i64: 2, 1, 1>, scalar_prefetch = 0 : i64, scratch_operands = 3 : i64, tpu.core_type = #tpu.core_type<tc>, window_params = [{transform_indices = @transform_0, window_bounds = array<i64: 1, 8, 32>}, {pipeline_mode = #tpu.pipeline_mode<synchronous>, transform_indices = @transform_1, window_bounds = array<i64: 32, 48>}, {transform_indices = @transform_2, window_bounds = array<i64: 1, 8, 16>}, {transform_indices = @transform_3, window_bounds = array<i64: 1, 8, 8>}]} {
    %c0_i32 = arith.constant 0 : i32
    %0 = arith.cmpi eq, %arg1, %c0_i32 : i32
    %c0_i32_0 = arith.constant 0 : i32
    %1 = arith.cmpi eq, %arg2, %c0_i32_0 : i32
    %2 = arith.andi %0, %1 : i1
    %3 = arith.extui %2 : i1 to i32
    %c0_i32_1 = arith.constant 0 : i32
    %4 = arith.cmpi ne, %3, %c0_i32_1 : i32
    scf.if %4 {
      %c0_17 = arith.constant 0 : index
      %c0_18 = arith.constant 0 : index
      %c0_19 = arith.constant 0 : index
      %43 = vector.load %arg3[%c0_17, %c0_18, %c0_19] : memref<1x8x32xf32, #tpu.memory_space<vmem>>, vector<1x8x32xf32>
      %44 = vector.shape_cast %43 : vector<1x8x32xf32> to vector<8x32xf32>
      %c0_20 = arith.constant 0 : index
      %c0_21 = arith.constant 0 : index
      %45 = vector.load %arg4[%c0_20, %c0_21] : memref<32x48xf32, #tpu.memory_space<vmem>>, vector<32x48xf32>
      %cst_22 = arith.constant dense<0.000000e+00> : vector<8x48xf32>
      %46 = tpu.matmul %44, %45, %cst_22 {dimension_numbers = #tpu.dot_dimension_numbers<[1], [0], [0], [1], [0, 0, 1, 1], [], []>} : vector<8x32xf32>, vector<32x48xf32>, vector<8x48xf32> -> vector<8x48xf32>
      %47 = vector.extract_strided_slice %46 {offsets = [0, 0], sizes = [8, 16], strides = [1, 1]} : vector<8x48xf32> to vector<8x16xf32>
      %c0_23 = arith.constant 0 : index
      %c0_24 = arith.constant 0 : index
      %48 = vector.load %arg7[%c0_23, %c0_24] : memref<8x16xf32, #tpu.memory_space<vmem>>, vector<8x16xf32>
      tpu.vector_store %arg7[%c0_23, %c0_24], %47 {strides = array<i32>} : memref<8x16xf32, #tpu.memory_space<vmem>>, vector<8x16xf32>,
      %49 = vector.extract_strided_slice %46 {offsets = [0, 16], sizes = [8, 16], strides = [1, 1]} : vector<8x48xf32> to vector<8x16xf32>
      %c0_25 = arith.constant 0 : index
      %c0_26 = arith.constant 0 : index
      %50 = vector.load %arg8[%c0_25, %c0_26] : memref<8x16xf32, #tpu.memory_space<vmem>>, vector<8x16xf32>
      tpu.vector_store %arg8[%c0_25, %c0_26], %49 {strides = array<i32>} : memref<8x16xf32, #tpu.memory_space<vmem>>, vector<8x16xf32>,
      %51 = vector.extract_strided_slice %46 {offsets = [0, 32], sizes = [8, 16], strides = [1, 1]} : vector<8x48xf32> to vector<8x16xf32>
      %c0_27 = arith.constant 0 : index
      %c0_28 = arith.constant 0 : index
      %52 = vector.load %arg9[%c0_27, %c0_28] : memref<8x16xf32, #tpu.memory_space<vmem>>, vector<8x16xf32>
      tpu.vector_store %arg9[%c0_27, %c0_28], %51 {strides = array<i32>} : memref<8x16xf32, #tpu.memory_space<vmem>>, vector<8x16xf32>,
    } else {
    }
    %c8_i32 = arith.constant 8 : i32
    %5 = arith.muli %arg1, %c8_i32 : i32
    %6 = tpu.assume_multiple %5, 8 : i32
    %c8_i32_2 = arith.constant 8 : i32
    %7 = arith.muli %arg2, %c8_i32_2 : i32
    %8 = tpu.assume_multiple %7, 8 : i32
    %9 = arith.index_cast %6 : i32 to index
    %c0 = arith.constant 0 : index
    %10 = vector.load %arg7[%9, %c0] : memref<8x16xf32, #tpu.memory_space<vmem>>, vector<8x16xf32>
    %11 = arith.index_cast %8 : i32 to index
    %c0_3 = arith.constant 0 : index
    %12 = vector.load %arg8[%11, %c0_3] : memref<8x16xf32, #tpu.memory_space<vmem>>, vector<8x16xf32>
    %cst = arith.constant dense<0.000000e+00> : vector<8x8xf32>
    %13 = tpu.matmul %10, %12, %cst {dimension_numbers = #tpu.dot_dimension_numbers<[1], [1], [0], [0], [0, 0, 1, 0], [], []>} : vector<8x16xf32>, vector<8x16xf32>, vector<8x8xf32> -> vector<8x8xf32>
    %14 = tpu.iota {dimensions = array<i32: 0>} : vector<8x8xi32>
    %15 = tpu.iota {dimensions = array<i32: 1>} : vector<8x8xi32>
    %16 = arith.subi %14, %15 : vector<8x8xi32>
    %17 = arith.subi %6, %8 : i32
    %18 = vector.broadcast %17 : i32 to vector<8x8xi32>
    %19 = arith.addi %16, %18 : vector<8x8xi32>
    %c0_i32_4 = arith.constant 0 : i32
    %20 = vector.broadcast %c0_i32_4 : i32 to vector<8x8xi32>
    %21 = arith.cmpi sge, %19, %20 : vector<8x8xi32>
    %cst_5 = arith.constant -1.000000e+30 : f32
    %22 = vector.broadcast %cst_5 : f32 to vector<8x8xf32>
    %23 = arith.select %21, %13, %22 : vector<8x8xi1>, vector<8x8xf32>
    %cst_6 = arith.constant dense<0xFF800000> : vector<8xf32>
    %24 = vector.multi_reduction <maximumf>, %23, %cst_6 [1] : vector<8x8xf32> to vector<8xf32>
    %25 = vector.shape_cast %24 : vector<8xf32> to vector<8x1xf32>
    %26 = vector.broadcast %25 : vector<8x1xf32> to vector<8x8xf32>
    %27 = arith.subf %23, %26 : vector<8x8xf32>
    %28 = math.exp %27 : vector<8x8xf32>
    %cst_7 = arith.constant dense<0.000000e+00> : vector<8xf32>
    %29 = vector.multi_reduction <add>, %28, %cst_7 [1] : vector<8x8xf32> to vector<8xf32>
    %30 = vector.shape_cast %29 : vector<8xf32> to vector<8x1xf32>
    %31 = tpu.reciprocal %30 {approx = true} : vector<8x1xf32> -> vector<8x1xf32>
    %32 = vector.broadcast %31 : vector<8x1xf32> to vector<8x8xf32>
    %33 = arith.mulf %28, %32 : vector<8x8xf32>
    %c0_8 = arith.constant 0 : index
    %c0_9 = arith.constant 0 : index
    %34 = vector.load %arg9[%c0_8, %c0_9] : memref<8x16xf32, #tpu.memory_space<vmem>>, vector<8x16xf32>
    %cst_10 = arith.constant dense<0.000000e+00> : vector<8x16xf32>
    %35 = tpu.matmul %33, %34, %cst_10 {dimension_numbers = #tpu.dot_dimension_numbers<[1], [0], [0], [1], [0, 0, 1, 1], [], []>} : vector<8x8xf32>, vector<8x16xf32>, vector<8x16xf32> -> vector<8x16xf32>
    %c0_11 = arith.constant 0 : index
    %c0_12 = arith.constant 0 : index
    %c0_13 = arith.constant 0 : index
    %36 = vector.load %arg5[%c0_11, %c0_12, %c0_13] : memref<1x8x16xf32, #tpu.memory_space<vmem>>, vector<1x8x16xf32>
    %37 = vector.shape_cast %36 : vector<1x8x16xf32> to vector<8x16xf32>
    %38 = vector.shape_cast %35 : vector<8x16xf32> to vector<1x8x16xf32>
    tpu.vector_store %arg5[%c0_11, %c0_12, %c0_13], %38 {strides = array<i32>} : memref<1x8x16xf32, #tpu.memory_space<vmem>>, vector<1x8x16xf32>,
    %39 = arith.truncf %33 : vector<8x8xf32> to vector<8x8xbf16>
    %c0_14 = arith.constant 0 : index
    %c0_15 = arith.constant 0 : index
    %c0_16 = arith.constant 0 : index
    %40 = vector.load %arg6[%c0_14, %c0_15, %c0_16] : memref<1x8x8xbf16, #tpu.memory_space<vmem>>, vector<1x8x8xbf16>
    %41 = vector.shape_cast %40 : vector<1x8x8xbf16> to vector<8x8xbf16>
    %42 = vector.shape_cast %39 : vector<8x8xbf16> to vector<1x8x8xbf16>
    tpu.vector_store %arg6[%c0_14, %c0_15, %c0_16], %42 {strides = array<i32>} : memref<1x8x8xbf16, #tpu.memory_space<vmem>>, vector<1x8x8xbf16>,
    return
  }
  func.func @transform_0(%arg0: i32, %arg1: i32, %arg2: i32) -> (i32, i32, i32) {
    %c0_i32 = arith.constant 0 : i32
    %c0_i32_0 = arith.constant 0 : i32
    %c0_i32_1 = arith.constant 0 : i32
    return %arg0, %c0_i32, %c0_i32_0 : i32, i32, i32
  }
  func.func @transform_1(%arg0: i32, %arg1: i32, %arg2: i32) -> (i32, i32) {
    %c0_i32 = arith.constant 0 : i32
    %c0_i32_0 = arith.constant 0 : i32
    %c0_i32_1 = arith.constant 0 : i32
    return %c0_i32, %c0_i32_0 : i32, i32
  }
  func.func @transform_2(%arg0: i32, %arg1: i32, %arg2: i32) -> (i32, i32, i32) {
    %c0_i32 = arith.constant 0 : i32
    %c0_i32_0 = arith.constant 0 : i32
    return %arg0, %arg1, %c0_i32 : i32, i32, i32
  }
  func.func @transform_3(%arg0: i32, %arg1: i32, %arg2: i32) -> (i32, i32, i32) {
    %c0_i32 = arith.constant 0 : i32
    %c0_i32_0 = arith.constant 0 : i32
    return %arg0, %arg1, %c0_i32 : i32, i32, i32
  }
}

</mosaic_0001>

<bundles_post_ra>
// kernel: tpu_custom_call.1
= control target key start
LH: loop header
LB: loop body
LE: loop exit
PB: predicated region body
PF: predicated region fallthrough
CT: control target
= control target key end

     0   :  { %9 = vsyncpa [#allocation6], 0  ;;  %s1020_s0 = inlined_call_operand.hbm [shape: f32[2,8,32], index: 0, kind: input, shape index: {}]   ;;  %s1021_s1 = inlined_call_operand.hbm [shape: f32[32,48], index: 1, kind: input, shape index: {}]   ;;  %s1022_s2 = inlined_call_operand.hbm [shape: f32[2,8,16], index: 2, kind: output, shape index: {0}]   ;;  %s1023_s3 = inlined_call_operand.hbm [shape: bf16[2,8,8], index: 3, kind: output, shape index: {1}]  }
   0x1   :  { %11 = vsyncpa [#allocation6 + $0x1], 0 }
   0x2   :  { %12 = vsyncpa [#allocation9], 0 }
   0x3   :  { %13 = vsyncpa [#allocation7], 0 }
   0x4   :  { %15 = vsyncpa [#allocation7 + $0x1], 0 }
   0x5   :  { %16 = vsyncpa [#allocation12], 0 }
   0x6   :  { %18 = vsyncpa [#allocation12 + $0x1], 0  ;;  %s848_s12 = smov 0   ;;  %s850_s13 = smov 0  }
   0x7   :  { %s852_s14 = smov 0   ;;  %s854_s15 = smov 0  }
   0x8   :  { %s856_s16 = smov 0   ;;  %s858_s17 = smov 0  }
   0x9 LB: > { %s535_s18 = sadd.s32 4294967295, %s821_s17   ;;  %p537_p0 = scmp.ge.s32.totalorder %s821_s17, 1  ;;  %s821_s17 = sphi %s858_s17, %s24_s17   ;;  %s817_s16 = sphi %s856_s16, %s1034_s16   ;;  %s813_s15 = sphi %s854_s15, %s1033_s15   ;;  %s809_s14 = sphi %s852_s14, %s1032_s14   ;;  %s805_s13 = sphi %s850_s13, %s1031_s13   ;;  %s801_s12 = sphi %s848_s12, %s1030_s12  }
   0xa   : > { %p880_p1 = scmp.eq.s32.totalorder %s535_s18, 0  ;;  %p151_p2 = scmp.lt.s32.totalorder %s821_s17, 3 }
   0xb   : > { %s162_s22 = sshll.u32 %s1021_s1, 4  ;;  %s823_s24 = smov [#allocation8]   ;;  %s163_s22 = int_to_ptr.hbm [resolvable:$true] %s162_s22 }
   0xc   : > { %p888_p3 = pnand %p537_p0, %p151_p2  ;;  %s164_s25 = sshll.u32 %s823_s24, 4  ;;  %s165_s25 = int_to_ptr.vmem [resolvable:$true] %s164_s25 }
   0xd   : > { %p539_p6 = scmp.ge.s32.totalorder %s821_s17, 2  ;;  %s824_s26 = smov 128  }
   0xe   : > { %p567_p4 = pneg %p888_p3  ;;  %s825_s27 = smov 8  }
   0xf   : > { %s536_s28 = sadd.s32 4294967294, %s821_s17   ;;  %s43_s29 = sadd.s32 1, %s817_s16 }
  0x10   : > { %p568_p5 = pnand %p567_p4, %p880_p1  ;;  %s50_s30 = sadd.s32 1, %s809_s14 }
  0x11   : > { %p45_p7 = scmp.ge.s32.totalorder %s43_s29, 2  ;;  %p57_p8 = scmp.ne.s32.totalorder %s809_s14, %s805_s13 }
  0x12   : > { %570 = dma.hbm_to_vmem [thread:$0]  (!%p568_p5), %s163_s22, 512, %s165_s25, [#allocation9], %s824_s26, %s824_s26, %s825_s27  }
  0x13   : > { %p58_p9 = scmp.eq.s32.totalorder %s821_s17, 0  ;;  %p63_p10 = scmp.ne.s32.totalorder %s805_s13, %s801_s12 }
  0x14   : > { %s1036_s29 = smov (%p45_p7, %s43_s29), 0  ;;  %p110_p13 = scmp.eq.s32.totalorder %s535_s18, 1 }
  0x15   : > { %p907_p11 = por %p58_p9, %p57_p8  ;;  %p913_p12 = por %p880_p1, %p63_p10 }
  0x16   : > { %s47_s6 = ssub.s32 %s817_s16, %s1036_s29  ;;  %p116_p2 = scmp.eq.s32.totalorder %s536_s28, 1 }
  0x17   : > { %p48_p0 = scmp.eq.s32.totalorder %s47_s6, 0  ;;  %p919_p4 = por %p110_p13, %p57_p8 }
  0x18   : > { %p583_p5 = scmp.lt.s32.totalorder %s821_s17, 2  ;;  %p927_p7 = por %p116_p2, %p63_p10 }
  0x19   : > { %s925_s8 = scalar_select %p48_p0, %s809_s14, %s50_s30  }
  0x1a   : > { %s178_s10 = sand.u32 1, %s809_s14   ;;  %s541_s20 = sshll.u32 %s817_s16, 3 }
  0x1b   : > { %s540_s11 = sshll.u32 %s178_s10, 3  ;;  %s186_s18 = scalar_lea.hbm %s1020_s0, %s541_s20 }
  0x1c   : > { %s182_s24 = scalar_lea.vmem [#allocation5], %s540_s11  ;;  %s188_s26 = sshll.u32 %s186_s18, 4  ;;  %s189_s26 = int_to_ptr.hbm [resolvable:$true] %s188_s26 }
  0x1d   : > { %s190_s25 = sshll.u32 %s182_s24, 4  ;;  %p572_p8 = pnand %p583_p5, %p907_p11  ;;  %s191_s25 = int_to_ptr.vmem [resolvable:$true] %s190_s25 }
  0x1e   : > { %s179_s27 = scalar_lea.sflag [#allocation6], %s178_s10  ;;  %199 = sbr.rel (%p888_p3) target bundleno = 838 (0x346), region = 28 }
  0x1f   : > { %574 = dma.hbm_to_vmem [thread:$0]  (!%p572_p8), %s189_s26, 128, %s191_s25, %s179_s27  }
  0x20   : > { %s941_s28 = sand.u32 (!%p888_p3), 1, %s805_s13  }
  0x21   : > { %s543_s30 = sshll.u32 (!%p888_p3), %s941_s28, 3  ;;  %s202_s6 = scalar_lea.sflag (!%p888_p3), [#allocation6], %s941_s28 }
  0x22   : > { %s205_s11 = scalar_lea.vmem (!%p888_p3), [#allocation5], %s543_s30 }
  0x23   : > { %784 = dma.done.wait (%p913_p12), %s202_s6, 128  }
  0x24   : > { %786 = vsyncadd (%p913_p12), %s202_s6, 4294967168 }
  0x25   : > { %788 = dma.done.wait (%p880_p1), [#allocation9], 512  }
  0x26   : > { %790 = vsyncadd (%p880_p1), [#allocation9], 4294966784  ;;  %v249_v0 = vld [vmem:[#allocation8 + $0x18] sm:$0xff]  ;;  %v248_v1 = vld [vmem:[#allocation8 + $0x10] sm:$0xff]  ;;  %vm250_vm0 = vcmask 261120   ;;  %vm274_vm1 = vcmask 130048   ;;  %v318_v9 = vlaneseq }
  0x27   : > { %266 = vmatpush.msra.mxu0 %v249_v0  ;;  %v247_v2 = vld [vmem:[#allocation8 + $0x8] sm:$0xff]  ;;  %v246_v3 = vld [vmem:[#allocation8] sm:$0xff]  ;;  %v245_v4 = vld [vmem:[%s205_s11] sm:$0xff]  ;;  %s826_s23 = smov 112   ;;  %vm328_vm3 = vcmask 64512   ;;  %s827_s19 = smov 96  }
  0x28   : > { %v319_v10 = vshrl.u32 %v318_v9, 7  ;;  %v321_v11 = vand.u32 127, %v318_v9  ;;  %s546_s4 = sshll.u32 %s941_s28, 2  ;;  %vm366_vm4 = vcmask 60416   ;;  %s554_s10 = sshll.u32 %s813_s15, 2 }
  0x29   : > { %267 = vmatpush.msra.mxu0 %v248_v1  ;;  %s238_s5 = scalar_lea.vmem [#allocation11], %s546_s4  ;;  %s400_s22 = scalar_lea.hbm %s1023_s3, %s554_s10 }
  0x2a   : > { %v322_v12 = vsub.s32 %v319_v10, %v321_v11  ;;  %s402_s18 = sshll.u32 %s238_s5, 4  ;;  %s404_s24 = sshll.u32 %s400_s22, 4  ;;  %s403_s18 = int_to_ptr.vmem [resolvable:$true] %s402_s18  ;;  %s405_s24 = int_to_ptr.hbm [resolvable:$true] %s404_s24 }
  0x2b   : > { %268 = vmatpush.msra.mxu0 %v247_v2  ;;  %s374_s25 = scalar_lea.sflag [#allocation12], %s941_s28  ;;  %s717_s26 = sshra.s32 %s405_s24, 4  ;;  %s718_s26 = int_to_ptr.hbm [resolvable:$true] %s717_s26 }
  0x2c   : > { %vm326_vm2 = vcmp.ge.s32.totalorder %v322_v12, 0  ;;  %s719_s27 = scalar_lea.hbm %s718_s26, 4  ;;  %p724_p10 = scmp.lt.s32.totalorder %s718_s26, %s1023_s3 }
  0x2d   : > { %269 = vmatpush.msra.mxu0 %v246_v3  ;;  %p720_p1 = scmp.ne.s32.totalorder %s718_s26, %s719_s27 }
  0x2e   : > { %547 = vmatmul.msk.f32.vlgmr.msra.gmra.mxu0 %vm250_vm0, %v245_v4 }
  0x2f   : > { %p721_p3 = pnand %p720_p1, %p919_p4 }
  0x31   : > { %p722_p9 = pneg %p721_p3 }
  0xab   : > { %v271_v5 = vpop.f32.mrf.mxu0 }
  0xac   : > { %275 = vst.msk [vmem:[#allocation2] sm:$0xff] %vm274_vm1, %v271_v5  ;;  %277 = vrot.lane.b32.xlu0 %v271_v5, %s826_s23  ;;  %s723_s23 = scalar_lea.hbm %s1023_s3, 8 }
  0xad   : > { %p725_p11 = scmp.lt.s32.totalorder %s723_s23, %s719_s27 }
  0xaf   : > { %p726_p12 = por %p725_p11, %p724_p10 }
  0xb1   : > { %p727_p13 = pnand %p726_p12, %p722_p9 }
  0xb3   : > { %v288_v8 = vld [vmem:[#allocation2] sm:$0xff] }
 0x11e   : > { %v278_v6 = vpop.permute.xlu0 %277 }
 0x11f   : > { %280 = vst.msk [vmem:[#allocation3] sm:$0xff] %vm274_vm1, %v278_v6 }
 0x126   : > { %v290_v7 = vld [vmem:[#allocation3] sm:$0xff] }
 0x127   : > { %548 = vmatpush.xpose.msk.msra.mxu1 %vm274_vm1, %v290_v7 }
 0x12a   : > { %549 = vmatmul.msk.f32.vlgmr.msra.gmra.mxu1 %vm274_vm1, %v288_v8 }
 0x1a7   : > { %v315_v13 = vpop.f32.mrf.mxu1 }
 0x1a8   : > { %v327_v14 = vsel %vm326_vm2, %v315_v13, -1e+30 }
 0x1a9   : > { %v329_v15 = vsel %vm328_vm3, %v327_v14, -inf }
 0x1aa   : > { %330 = vmax.xlane.f32.xlu0 %v329_v15 }
 0x21d   : > { %v331_v16 = vpop.xlane.xlu0 %330 }
 0x21e   : > { %v332_v17 = vsub.f32 %v327_v14, %v331_v16 }
 0x220   : > { %v333_v18 = vmul.f32 1.442695, %v332_v17 }
 0x222   : > { %639 = vpow2.f32 %v333_v18 }
 0x228   : > { %v640_v19 = vpop.eup %639 }
 0x229   : > { %v335_v20 = vsel %vm328_vm3, %v640_v19, 0.0 }
 0x22a   : > { %336 = vadd.xlane.f32.xlu1 %v335_v20 }
 0x243   : > { %281 = vrot.lane.b32.xlu1 %v271_v5, %s827_s19 }
 0x29d   : > { %v337_v21 = vpop.xlane.xlu1 %336 }
 0x29e   : > { %641 = vrcp.f32 %v337_v21 }
 0x2a4   : > { %v642_v22 = vpop.eup %641 }
 0x2a5   : > { %v339_v23 = vmul.f32 %v642_v22, %v640_v19 }
 0x2a7   : > { %v365_v24 = vpack.c.bf16 %v339_v23, %v339_v23 }
 0x2a9   : > { %367 = vst.msk [vmem:[%s238_s5] sm:$0xf] %vm366_vm4, %v365_v24 }
 0x2b5   : > { %v282_v25 = vpop.permute.xlu1 %281 }
 0x2b6   : > { %284 = vst.msk [vmem:[#allocation4] sm:$0xff] %vm274_vm1, %v282_v25 }
 0x2bd   : > { %v340_v26 = vld [vmem:[#allocation4] sm:$0xff] }
 0x2be   : > { %359 = vmatpush.msra.mxu2 %v340_v26 }
 0x2bf   : > { %550 = vmatmul.msk.f32.vlgmr.msra.gmra.mxu2 %vm328_vm3, %v339_v23 }
 0x2c0   : > { %730 = shalt.err (!%p727_p13)
}
 0x2c1   : > { %564 = dma.vmem_to_hbm [thread:$0]  (%p919_p4), %s403_s18, 64, %s405_s24, %s374_s25  }
 0x2c2   : > { %s553_s5 = sshll.u32 %s813_s15, 3  ;;  %s231_s22 = scalar_lea.vmem [#allocation10], %s543_s30 }
 0x2c3   : > { %s385_s21 = scalar_lea.hbm %s1022_s2, %s553_s5  ;;  %s387_s6 = sshll.u32 %s231_s22, 4  ;;  %s388_s6 = int_to_ptr.vmem [resolvable:$true] %s387_s6 }
 0x2c4   : > { %s389_s26 = sshll.u32 %s385_s21, 4  ;;  %s369_s27 = scalar_lea.sflag [#allocation7], %s941_s28  ;;  %s390_s26 = int_to_ptr.hbm [resolvable:$true] %s389_s26 }
 0x2c5   : > { %s745_s11 = sshra.s32 %s390_s26, 4  ;;  %s751_s24 = scalar_lea.hbm %s1022_s2, 16  ;;  %s746_s11 = int_to_ptr.hbm [resolvable:$true] %s745_s11 }
 0x2c6   : > { %s747_s23 = scalar_lea.hbm %s746_s11, 8  ;;  %p752_p8 = scmp.lt.s32.totalorder %s746_s11, %s1022_s2 }
 0x2c7   : > { %p748_p0 = scmp.ne.s32.totalorder %s746_s11, %s747_s23  ;;  %p753_p1 = scmp.lt.s32.totalorder %s751_s24, %s747_s23 }
 0x2c9   : > { %p749_p2 = pnand %p748_p0, %p919_p4  ;;  %p754_p3 = por %p753_p1, %p752_p8 }
 0x2cb   : > { %p750_p5 = pneg %p749_p2 }
 0x2cd   : > { %p755_p9 = pnand %p754_p3, %p750_p5 }
 0x342   : > { %v361_v27 = vpop.f32.mrf.mxu2 }
 0x343   : > { %364 = vst.msk [vmem:[%s231_s22] sm:$0xff] %vm274_vm1, %v361_v27 }
 0x344   : > { %758 = shalt.err (!%p755_p9)
}
 0x345   : > { %563 = dma.vmem_to_hbm [thread:$0]  (%p919_p4), %s388_s6, 128, %s390_s26, %s369_s27  }
 0x346 PF: > { %s416_s28 = sand.u32 1, %s801_s12   ;;  %p576_p10 = pnand %p539_p6, %p927_p7 }
 0x347   : > { %s417_s19 = scalar_lea.sflag [#allocation7], %s416_s28 }
 0x348   : > { %p577_p11 = pneg %p576_p10 }
 0x34a   : > { %792 = dma.done.wait (%p577_p11), %s417_s19, 128  }
 0x34b   : > { %794 = vsyncadd (%p577_p11), %s417_s19, 4294967168  ;;  %s427_s4 = scalar_lea.sflag [#allocation12], %s416_s28 }
 0x34c   : > { %796 = dma.done.wait (%p577_p11), %s427_s4, 64  }
 0x34d   : > { %798 = vsyncadd (%p577_p11), %s427_s4, 4294967232  ;;  %s24_s17 = sadd.s32 1, %s821_s17   ;;  %s1030_s12 = smov %s805_s13 }
 0x34e   : > { %p21_p12 = scmp.ge.s32.totalorder %s24_s17, 4   ;;  %s1031_s13 = smov %s809_s14 }
 0x34f   : > { %s1032_s14 = smov %s925_s8  ;;  %s1033_s15 = smov %s817_s16 }
 0x350   : > { %s1034_s16 = smov %s1036_s29  ;;  %23 = sbr.rel (!%p21_p12) target bundleno = 9 (0x9), region = 100 }
 0x355   :  { %433 = vsyncpa [#allocation6], 1 }
 0x356   :  { %435 = vsyncpa [#allocation6 + $0x1], 1 }
 0x357   :  { %436 = vsyncpa [#allocation9], 1 }
 0x358   :  { %437 = vsyncpa [#allocation7], 1 }
 0x359   :  { %439 = vsyncpa [#allocation7 + $0x1], 1 }
 0x35a   :  { %440 = vsyncpa [#allocation12], 1 }
 0x35b   :  { %442 = vsyncpa [#allocation12 + $0x1], 1 }

</bundles_post_ra>
